<compile_context>
chip_gen: v5e
topology: v5e:2x2
jax: 0.10.0
libtpu: 0.0.40
codegen_flags: <defaults>
</compile_context>

<pallas_src>
import jax
import jax.numpy as jnp
from jax.experimental import pallas as pl
from jax.experimental.pallas import tpu as pltpu


# ----------------------------------------------------------------------------
# Fused GP forward kernel: out_rows = scale * cos(x_rows*inv_len @ z + b) @ wT
# ----------------------------------------------------------------------------
def _gp_kernel(scal_ref, x_ref, z_ref, b_ref, w_ref, o_ref):
    inv_len = scal_ref[0]          # 1 / exp(log_kernel_length)
    scale = scal_ref[1]            # sqrt(2 * exp(log_kernel_amp) / L)
    # (rows, D) @ (D, L) on the MXU; input length-scaling on the VPU.
    xz = jnp.dot(x_ref[...] * inv_len, z_ref[...],
                 preferred_element_type=jnp.float32)
    # Random-feature map: cos on the EUP, bias broadcast + scale on the VPU.
    phi = scale * jnp.cos(xz + b_ref[...])                      # (rows, L)
    # All samples at once: (rows, L) @ (L, S) -> (rows, S), lane axis = S.
    o_ref[...] = jnp.dot(phi, w_ref[...],
                         preferred_element_type=jnp.float32).astype(o_ref.dtype)


def gp_forward(scalars, x, z, b, w_t, *, row_block=256):
    """scalars: (2,) f32; x: (N, D); z: (D, L); b: (1, L); w_t: (L, S).

    Returns (N, S) float32 (sample axis on lanes)."""
    N, D = x.shape
    L, S = w_t.shape
    rb = N if N <= row_block else row_block     # single step for small N
    grid = (pl.cdiv(N, rb),)
    return pl.pallas_call(
        _gp_kernel,
        out_shape=jax.ShapeDtypeStruct((N, S), jnp.float32),
        grid=grid,
        in_specs=[
            pl.BlockSpec(memory_space=pltpu.MemorySpace.SMEM),   # scalars
            pl.BlockSpec((rb, D), lambda i: (i, 0)),             # x row tile
            pl.BlockSpec((D, L), lambda i: (0, 0)),              # z (resident)
            pl.BlockSpec((1, L), lambda i: (0, 0)),              # b (resident)
            pl.BlockSpec((L, S), lambda i: (0, 0)),              # w_T (resident)
        ],
        out_specs=pl.BlockSpec((rb, S), lambda i: (i, 0)),
        compiler_params=pltpu.CompilerParams(
            dimension_semantics=("parallel",)),
    )(scalars, x, z, b, w_t)


# ----------------------------------------------------------------------------
# GP module wrapper (parameter / fixed-noise setup is plain-JAX glue).
# ----------------------------------------------------------------------------
class GP:
    def __init__(self, num_samples, input_dim=1, output_dim=1,
                 inner_layer_dim=10, kernel_amp=1.0, kernel_length=1.0,
                 seed=2147483647, fix_random_noise=True):
        self.num_samples = num_samples
        self.input_dim = input_dim
        self.output_dim = output_dim
        self.inner_layer_dim = inner_layer_dim
        self.inner_layer_dim_inv = 1.0 / inner_layer_dim
        self.fix_random_noise = fix_random_noise

        # Parameters (f32 on TPU; PyTorch default was f64).
        self.log_kernel_amp = jnp.log(jnp.asarray(kernel_amp, jnp.float32))
        self.log_kernel_length = jnp.log(jnp.asarray(kernel_length, jnp.float32))

        # Random-feature frequencies / phases and the fixed per-sample noise.
        # TODO(synk): torch.Generator-based Gaussian/Uniform samplers are
        # emulated with jax.random (same distributions, different bitstream).
        key = jax.random.PRNGKey(seed % (2 ** 31))
        kz, kb, kw = jax.random.split(key, 3)
        self.z = jax.random.normal(
            kz, (input_dim, inner_layer_dim), jnp.float32)
        self.b = 2.0 * jnp.pi * jax.random.uniform(
            kb, (1, inner_layer_dim), jnp.float32)
        # fix_random_noise=True -> w drawn once at init and reused every call.
        self.noise = jax.random.normal(
            kw, (num_samples, inner_layer_dim, 1), jnp.float32)

    def forward(self, inputs):
        """inputs: (N, D)  ->  samples: (num_samples, N, 1)."""
        x = inputs.astype(jnp.float32)
        inv_len = jnp.exp(-self.log_kernel_length)
        scale = jnp.sqrt(
            2.0 * jnp.exp(self.log_kernel_amp) * self.inner_layer_dim_inv)
        scalars = jnp.stack([inv_len, scale]).astype(jnp.float32)     # (2,)
        # (S, L, 1) -> (L, S): all samples become one lane-dense matmul.
        w_t = jnp.transpose(self.noise[:, :, 0])                      # (L, S)
        out_ns = gp_forward(scalars, x, self.z, self.b, w_t)          # (N, S)
        return jnp.transpose(out_ns)[:, :, None]                      # (S,N,1)


# ----------------------------------------------------------------------------
# Pure-JAX reference (mirrors the PyTorch forward) for a correctness check.
# ----------------------------------------------------------------------------
def _ref_forward(model, inputs):
    x = inputs.astype(jnp.float32) / jnp.exp(model.log_kernel_length)
    scale = jnp.sqrt(
        2.0 * jnp.exp(model.log_kernel_amp) * model.inner_layer_dim_inv)
    phi = scale * jnp.cos(x @ model.z + model.b)          # (N, L)
    return jnp.einsum("nl,slo->sno", phi, model.noise)    # (S, N, 1)


if __name__ == "__main__":
    # Small shapes consistent with the module's forward.
    num_samples = 4
    N = 16                 # minibatch
    input_dim = 2
    inner_layer_dim = 32

    model = GP(num_samples, input_dim=input_dim, output_dim=1,
               inner_layer_dim=inner_layer_dim, kernel_amp=2.0,
               kernel_length=1.5, seed=2147483647, fix_random_noise=True)

    key = jax.random.PRNGKey(0)
    x = jax.random.normal(key, (N, input_dim), jnp.float32)

    out = jax.block_until_ready(model.forward(x))
    assert out.shape == (num_samples, N, 1), out.shape

    ref = jax.block_until_ready(_ref_forward(model, x))
    err = float(jnp.max(jnp.abs(out - ref)))
    assert err < 1e-4, f"mismatch vs reference: {err}"

    print("KERNEL_OK")
</pallas_src>

<mosaic_0001>
module attributes {stable_mosaic.version = 11 : i64} {
  func.func @_gp_kernel(%arg0: i32, %arg1: memref<2xf32, #tpu.memory_space<smem>>, %arg2: memref<16x2xf32, #tpu.memory_space<vmem>>, %arg3: memref<2x32xf32, #tpu.memory_space<vmem>>, %arg4: memref<1x32xf32, #tpu.memory_space<vmem>>, %arg5: memref<32x4xf32, #tpu.memory_space<vmem>>, %arg6: memref<16x4xf32, #tpu.memory_space<vmem>>) attributes {dimension_semantics = [#tpu.dimension_semantics<parallel>], iteration_bounds = array<i64: 1>, scalar_prefetch = 0 : i64, scratch_operands = 0 : i64, tpu.core_type = #tpu.core_type<tc>, window_params = [{transform_indices = @transform_0, window_bounds = array<i64: 2>}, {transform_indices = @transform_1, window_bounds = array<i64: 16, 2>}, {pipeline_mode = #tpu.pipeline_mode<synchronous>, transform_indices = @transform_2, window_bounds = array<i64: 2, 32>}, {pipeline_mode = #tpu.pipeline_mode<synchronous>, transform_indices = @transform_3, window_bounds = array<i64: 1, 32>}, {pipeline_mode = #tpu.pipeline_mode<synchronous>, transform_indices = @transform_4, window_bounds = array<i64: 32, 4>}, {transform_indices = @transform_5, window_bounds = array<i64: 16, 4>}]} {
    %c0 = arith.constant 0 : index
    %0 = memref.load %arg1[%c0] : memref<2xf32, #tpu.memory_space<smem>>
    %c1 = arith.constant 1 : index
    %1 = memref.load %arg1[%c1] : memref<2xf32, #tpu.memory_space<smem>>
    %c0_0 = arith.constant 0 : index
    %c0_1 = arith.constant 0 : index
    %2 = vector.load %arg2[%c0_0, %c0_1] : memref<16x2xf32, #tpu.memory_space<vmem>>, vector<16x2xf32>
    %3 = vector.broadcast %0 : f32 to vector<16x2xf32>
    %4 = arith.mulf %2, %3 : vector<16x2xf32>
    %c0_2 = arith.constant 0 : index
    %c0_3 = arith.constant 0 : index
    %5 = vector.load %arg3[%c0_2, %c0_3] : memref<2x32xf32, #tpu.memory_space<vmem>>, vector<2x32xf32>
    %cst = arith.constant dense<0.000000e+00> : vector<16x32xf32>
    %6 = tpu.matmul %4, %5, %cst {dimension_numbers = #tpu.dot_dimension_numbers<[1], [0], [0], [1], [0, 0, 1, 1], [], []>} : vector<16x2xf32>, vector<2x32xf32>, vector<16x32xf32> -> vector<16x32xf32>
    %c0_4 = arith.constant 0 : index
    %c0_5 = arith.constant 0 : index
    %7 = vector.load %arg4[%c0_4, %c0_5] : memref<1x32xf32, #tpu.memory_space<vmem>>, vector<1x32xf32>
    %8 = vector.broadcast %7 : vector<1x32xf32> to vector<16x32xf32>
    %9 = arith.addf %6, %8 : vector<16x32xf32>
    %10 = math.cos %9 : vector<16x32xf32>
    %11 = vector.broadcast %1 : f32 to vector<16x32xf32>
    %12 = arith.mulf %11, %10 : vector<16x32xf32>
    %c0_6 = arith.constant 0 : index
    %c0_7 = arith.constant 0 : index
    %13 = vector.load %arg5[%c0_6, %c0_7] : memref<32x4xf32, #tpu.memory_space<vmem>>, vector<32x4xf32>
    %cst_8 = arith.constant dense<0.000000e+00> : vector<16x4xf32>
    %14 = tpu.matmul %12, %13, %cst_8 {dimension_numbers = #tpu.dot_dimension_numbers<[1], [0], [0], [1], [0, 0, 1, 1], [], []>} : vector<16x32xf32>, vector<32x4xf32>, vector<16x4xf32> -> vector<16x4xf32>
    %c0_9 = arith.constant 0 : index
    %c0_10 = arith.constant 0 : index
    %15 = vector.load %arg6[%c0_9, %c0_10] : memref<16x4xf32, #tpu.memory_space<vmem>>, vector<16x4xf32>
    tpu.vector_store %arg6[%c0_9, %c0_10], %14 {strides = array<i32>} : memref<16x4xf32, #tpu.memory_space<vmem>>, vector<16x4xf32>,
    return
  }
  func.func @transform_0(%arg0: i32) -> i32 {
    %c0_i32 = arith.constant 0 : i32
    %c0_i32_0 = arith.constant 0 : i32
    return %c0_i32 : i32
  }
  func.func @transform_1(%arg0: i32) -> (i32, i32) {
    %c0_i32 = arith.constant 0 : i32
    %c0_i32_0 = arith.constant 0 : i32
    return %arg0, %c0_i32 : i32, i32
  }
  func.func @transform_2(%arg0: i32) -> (i32, i32) {
    %c0_i32 = arith.constant 0 : i32
    %c0_i32_0 = arith.constant 0 : i32
    %c0_i32_1 = arith.constant 0 : i32
    return %c0_i32, %c0_i32_0 : i32, i32
  }
  func.func @transform_3(%arg0: i32) -> (i32, i32) {
    %c0_i32 = arith.constant 0 : i32
    %c0_i32_0 = arith.constant 0 : i32
    %c0_i32_1 = arith.constant 0 : i32
    return %c0_i32, %c0_i32_0 : i32, i32
  }
  func.func @transform_4(%arg0: i32) -> (i32, i32) {
    %c0_i32 = arith.constant 0 : i32
    %c0_i32_0 = arith.constant 0 : i32
    %c0_i32_1 = arith.constant 0 : i32
    return %c0_i32, %c0_i32_0 : i32, i32
  }
  func.func @transform_5(%arg0: i32) -> (i32, i32) {
    %c0_i32 = arith.constant 0 : i32
    %c0_i32_0 = arith.constant 0 : i32
    return %arg0, %c0_i32 : i32, i32
  }
}

</mosaic_0001>

<bundles_post_ra>
// kernel: tpu_custom_call.1
= control target key start
LH: loop header
LB: loop body
LE: loop exit
PB: predicated region body
PF: predicated region fallthrough
CT: control target
= control target key end

     0   :  { %10 = vsyncpa [#allocation3], 0  ;;  %s472_s21 = smov [#allocation2]   ;;  %s700_s0 = inlined_call_operand.vmem [shape: f32[2], index: 0, kind: input, shape index: {}]   ;;  %s701_s1 = inlined_call_operand.vmem [shape: f32[16,2], index: 1, kind: input, shape index: {}]   ;;  %s702_s2 = inlined_call_operand.vmem [shape: f32[2,32], index: 2, kind: input, shape index: {}]   ;;  %s703_s3 = inlined_call_operand.vmem [shape: f32[1,32], index: 3, kind: input, shape index: {}]   ;;  %s704_s4 = inlined_call_operand.vmem [shape: f32[32,4], index: 4, kind: input, shape index: {}]   ;;  %s705_s5 = inlined_call_operand.vmem [shape: f32[16,4], index: 5, kind: output, shape index: {}]  }
   0x1   :  { %s16_s20 = sshll.u32 %s700_s0, 4  ;;  %s17_s20 = int_to_ptr.vmem [resolvable:$true] %s16_s20 }
   0x2   :  { %19 = dma.vmem_to_smem %s17_s20, 16, %s472_s21, [#allocation3]  }
   0x3   :  { %470 = dma.done.wait [#allocation3], 16  }
   0x4   :  { %471 = vsyncadd [#allocation3], 4294967280 }
   0x5   :  { %32 = sfence }
   0x6   :  { %v40_v0 = vld [vmem:[%s702_s2] sm:$0x3]  ;;  %vm52_vm0 = vcmask 1041408   ;;  %s33_s24 = sld [smem:[#allocation2]]  ;;  %v36_v2 = vld [vmem:[%s701_s1 + $0x8] sm:$0xff]  ;;  %vm45_vm1 = vcmask 15360  }
   0x7   :  { %433 = vmatpush.msk.msra.mxu0 %vm52_vm0, %v40_v0  ;;  %444 = vmatpush.msk.msra.mxu3 %vm52_vm0, %v40_v0  ;;  %v35_v1 = vld [vmem:[%s701_s1] sm:$0xff]  ;;  %v473_v27 = vmov 683565275   ;;  %v474_v29 = vmov 2475754826  }
   0x8   :  { %v457_v6 = vld [vmem:[%s703_s3] ss:$0 sm:$0xff]  ;;  %v475_v31 = vmov 2131351028   ;;  %v476_v33 = vmov 2102212464  }
   0x9   :  { %v477_v35 = vmov 920167782   ;;  %v478_v44 = vmov 1326507024  }
   0xc   :  { %v37_v3 = vstv %s33_s24 }
   0xd   :  { %v38_v4 = vmul.f32 %v37_v3, %v35_v1  ;;  %v39_v5 = vmul.f32 %v37_v3, %v36_v2 }
   0xf   :  { %434 = vmatmul.msk.f32.vlgmr.msra.gmra.mxu0 %vm45_vm1, %v38_v4  ;;  %435 = vmatmul.msk.f32.vlgmr.msra.gmra.mxu3 %vm45_vm1, %v39_v5 }
  0x8c   :  { %v73_v7 = vpop.f32.mrf.mxu0 }
  0x8d   :  { %v525_v8 = vadd.f32 %v457_v6, %v73_v7 }
  0x8f   :  { %v79_v9 = vand.u32 2147483647, %v525_v8  ;;  %v82_v10 = vand.u32 2139095040, %v525_v8 }
  0x91   :  { %v83_v11 = vshrl.u32 %v82_v10, 23  ;;  %v86_v12 = vand.u32 8388607, %v79_v9 }
  0x92   :  { %v76_v13 = vpop.f32.mrf.mxu3 }
  0x93   :  { %v436_v14 = vadd.s32 4294967169, %v83_v11  ;;  %v531_v15 = vadd.f32 %v457_v6, %v76_v13  ;;  %v87_v16 = vor.u32 8388608, %v86_v12 }
  0x95   :  { %v89_v17 = vadd.s32 1, %v436_v14  ;;  %v236_v18 = vand.u32 2139095040, %v531_v15  ;;  %v534_v20 = vshll.u32 %v87_v16, 8  ;;  %v233_v21 = vand.u32 2147483647, %v531_v15 }
  0x97   :  { %vm90_vm2 = vcmp.gt.s32.totalorder %v89_v17, 0  ;;  %v237_v22 = vshrl.u32 %v236_v18, 23  ;;  %v128_v37 = vand.u32 65535, %v534_v20  ;;  %v240_v38 = vand.u32 8388607, %v233_v21 }
  0x98   :  { %v91_v19 = vsel %vm90_vm2, %v89_v17, 0  ;;  %v129_v52 = vshrl.u32 %v534_v20, 16 }
  0x99   :  { %v92_v23 = vshrl.u32 %v91_v19, 5  ;;  %v93_v24 = vand.u32 31, %v91_v19  ;;  %v439_v25 = vadd.s32 4294967169, %v237_v22  ;;  %v241_v58 = vor.u32 8388608, %v240_v38 }
  0x9a   :  { %v479_v38 = vmov 0  }
  0x9b   :  { %v94_v26 = vsub.s32 32, %v93_v24  ;;  %v96_v28 = vshll.u32 %v473_v27, %v93_v24  ;;  %v99_v30 = vshll.u32 %v474_v29, %v93_v24  ;;  %v102_v32 = vshll.u32 %v475_v31, %v93_v24 }
  0x9c   :  { %v105_v34 = vshll.u32 %v476_v33, %v93_v24  ;;  %v108_v36 = vshll.u32 %v477_v35, %v93_v24  ;;  %vm111_vm3 = vcmp.lt.s32.totalorder %v92_v23, 1  ;;  %vm114_vm4 = vcmp.lt.s32.totalorder %v92_v23, 4 }
  0x9d   :  { %v97_v39 = vshrl.u32 %v474_v29, %v94_v26  ;;  %v100_v40 = vshrl.u32 %v475_v31, %v94_v26  ;;  %v103_v41 = vshrl.u32 %v476_v33, %v94_v26  ;;  %v95_v42 = vshrl.u32 %v473_v27, %v94_v26 }
  0x9e   :  { %v106_v43 = vshrl.u32 %v477_v35, %v94_v26  ;;  %v109_v45 = vshrl.u32 %v478_v44, %v94_v26  ;;  %v243_v49 = vadd.s32 1, %v439_v25  ;;  %vm113_vm5 = vcmp.lt.s32.totalorder %v92_v23, 3 }
  0x9f   :  { %v98_v46 = vor.u32 %v97_v39, %v96_v28  ;;  %v101_v47 = vor.u32 %v100_v40, %v99_v30  ;;  %v104_v48 = vor.u32 %v103_v41, %v102_v32  ;;  %vm112_vm6 = vcmp.lt.s32.totalorder %v92_v23, 2 }
  0xa0   :  { %v107_v50 = vor.u32 %v106_v43, %v105_v34  ;;  %v110_v51 = vor.u32 %v109_v45, %v108_v36  ;;  %vm244_vm7 = vcmp.gt.s32.totalorder %v243_v49, 0  ;;  %v560_v7 = vshll.u32 %v241_v58, 8 }
  0xa1   :  { %v116_v53 = vsel %vm114_vm4, %v104_v48, 2102212464  ;;  %v119_v54 = vsel %vm111_vm3, %v98_v46, %v101_v47  ;;  %v123_v55 = vsel %vm111_vm3, %v101_v47, %v104_v48  ;;  %v115_v59 = vsel %vm111_vm3, %v95_v42, %v98_v46 }
  0xa2   :  { %v120_v56 = vsel %vm114_vm4, %v107_v50, 920167782  ;;  %v124_v57 = vsel %vm114_vm4, %v110_v51, 1326507024  ;;  %v117_v60 = vsel %vm113_vm5, %v101_v47, %v116_v53  ;;  %v245_v1 = vsel %vm244_vm7, %v243_v49, 0 }
  0xa3   :  { %v121_v61 = vsel %vm113_vm5, %v104_v48, %v120_v56  ;;  %v125_v62 = vsel %vm113_vm5, %v107_v50, %v124_v57  ;;  %v558_v6 = vsel %vm112_vm6, %v115_v59, %v117_v60  ;;  %v562_v12 = vshrl.u32 %v245_v1, 5 }
  0xa4   :  { %v122_v63 = vsel %vm112_vm6, %v119_v54, %v121_v61  ;;  %v126_v0 = vsel %vm112_vm6, %v123_v55, %v125_v62  ;;  %v247_v13 = vand.u32 31, %v245_v1 }
  0xa5   :  { %v130_v2 = vand.u32 65535, %v126_v0  ;;  %v131_v3 = vshrl.u32 %v126_v0, 16  ;;  %v152_v4 = vand.u32 65535, %v122_v63  ;;  %v153_v5 = vshrl.u32 %v122_v63, 16 }
  0xa6   :  { %v248_v36 = vsub.s32 32, %v247_v13  ;;  %v253_v47 = vshll.u32 %v474_v29, %v247_v13  ;;  %v256_v53 = vshll.u32 %v475_v31, %v247_v13  ;;  %v259_v55 = vshll.u32 %v476_v33, %v247_v13 }
  0xa7   :  { %v133_v10 = vmul.u32 %v131_v3, %v128_v37  ;;  %v134_v11 = vmul.u32 %v130_v2, %v129_v52  ;;  %v132_v14 = vmul.u32 %v130_v2, %v128_v37  ;;  %v135_v16 = vmul.u32 %v131_v3, %v129_v52 }
  0xa8   :  { %v155_v17 = vmul.u32 %v153_v5, %v128_v37  ;;  %v156_v18 = vmul.u32 %v152_v4, %v129_v52  ;;  %v154_v24 = vmul.u32 %v152_v4, %v128_v37  ;;  %v157_v25 = vmul.u32 %v153_v5, %v129_v52 }
  0xa9   :  { %v136_v19 = vshll.u32 %v133_v10, 16  ;;  %v137_v22 = vshrl.u32 %v133_v10, 16  ;;  %v138_v26 = vshll.u32 %v134_v11, 16  ;;  %v139_v28 = vshrl.u32 %v134_v11, 16 }
  0xaa   :  { %v158_v23 = vshll.u32 %v155_v17, 16  ;;  %v159_v30 = vshrl.u32 %v155_v17, 16  ;;  %v160_v34 = vshll.u32 %v156_v18, 16  ;;  %v161_v40 = vshrl.u32 %v156_v18, 16 }
  0xab   :  { %vm140_vm8 = vc.u32 %v132_v14, %v136_v19  ;;  %v142_v32 = vadd.s32 %v136_v19, %v132_v14  ;;  %v250_v37 = vshll.u32 %v473_v27, %v247_v13  ;;  %v251_v50 = vshrl.u32 %v474_v29, %v248_v36 }
  0xac   :  { %v141_v39 = vsel %vm140_vm8, 1, %v479_v38  ;;  %vm162_vm9 = vc.u32 %v154_v24, %v158_v23  ;;  %v164_v41 = vadd.s32 %v158_v23, %v154_v24  ;;  %v254_v51 = vshrl.u32 %v475_v31, %v248_v36 }
  0xad   :  { %v143_v42 = vadd.s32 %v141_v39, %v135_v16  ;;  %vm144_vm10 = vc.u32 %v142_v32, %v138_v26  ;;  %v163_v43 = vsel %vm162_vm9, 1, %v479_v38  ;;  %v257_v54 = vshrl.u32 %v476_v33, %v248_v36 }
  0xae   :  { %v145_v45 = vsel %vm144_vm10, 1, %v479_v38  ;;  %v165_v46 = vadd.s32 %v163_v43, %v157_v25  ;;  %vm166_vm11 = vc.u32 %v164_v41, %v160_v34  ;;  %v575_v57 = vor.u32 %v251_v50, %v250_v37 }
  0xaf   :  { %v147_v48 = vadd.s32 %v145_v45, %v143_v42  ;;  %v167_v49 = vsel %vm166_vm11, 1, %v479_v38  ;;  %v577_v58 = vor.u32 %v254_v51, %v253_v47  ;;  %v260_v59 = vshrl.u32 %v477_v35, %v248_v36 }
  0xb0   :  { %v169_v52 = vadd.s32 %v167_v49, %v165_v46  ;;  %v258_v61 = vor.u32 %v257_v54, %v256_v53  ;;  %v262_v29 = vshll.u32 %v477_v35, %v247_v13  ;;  %v263_v62 = vshrl.u32 %v478_v44, %v248_v36 }
  0xb1   :  { %v148_v56 = vadd.s32 %v147_v48, %v137_v22  ;;  %v584_v31 = vadd.s32 %v164_v41, %v160_v34  ;;  %v261_v0 = vor.u32 %v260_v59, %v259_v55  ;;  %vm265_vm12 = vcmp.lt.s32.totalorder %v562_v12, 1 }
  0xb2   :  { %v170_v60 = vadd.s32 %v169_v52, %v159_v30  ;;  %v264_v1 = vor.u32 %v263_v62, %v262_v29  ;;  %vm268_vm13 = vcmp.lt.s32.totalorder %v562_v12, 4  ;;  %v273_v2 = vsel %vm265_vm12, %v575_v57, %v577_v58 }
  0xb3   :  { %v582_v63 = vadd.s32 %v148_v56, %v139_v28  ;;  %vm267_vm15 = vcmp.lt.s32.totalorder %v562_v12, 3  ;;  %v274_v35 = vsel %vm268_vm13, %v261_v0, 920167782  ;;  %vm266_vm0 = vcmp.lt.s32.totalorder %v562_v12, 2 }
  0xb4   :  { %v171_v33 = vadd.s32 %v170_v60, %v161_v40  ;;  %v275_v3 = vsel %vm267_vm15, %v258_v61, %v274_v35  ;;  %v277_v4 = vsel %vm265_vm12, %v577_v58, %v258_v61  ;;  %v172_v5 = vmul.u32 %v534_v20, %v558_v6 }
  0xb5   :  { %vm174_vm14 = vc.u32 %v582_v63, %v584_v31  ;;  %v276_v10 = vsel %vm266_vm0, %v273_v2, %v275_v3  ;;  %v278_v11 = vsel %vm268_vm13, %v264_v1, 1326507024  ;;  %v282_v13 = vand.u32 65535, %v560_v7 }
  0xb6   :  { %v175_v44 = vadd.s32 1, %v171_v33  ;;  %v279_v16 = vsel %vm267_vm15, %v261_v0, %v278_v11  ;;  %v306_v17 = vand.u32 65535, %v276_v10  ;;  %v307_v18 = vshrl.u32 %v276_v10, 16 }
  0xb7   :  { %v280_v22 = vsel %vm266_vm0, %v277_v4, %v279_v16  ;;  %v283_v20 = vshrl.u32 %v560_v7, 16  ;;  %v249_v23 = vshrl.u32 %v473_v27, %v248_v36  ;;  %v270_v39 = vsel %vm268_vm13, %v258_v61, 2102212464 }
  0xb8   :  { %v176_v14 = vsel %vm174_vm14, %v175_v44, %v171_v33  ;;  %v284_v6 = vand.u32 65535, %v280_v22  ;;  %v285_v24 = vshrl.u32 %v280_v22, 16  ;;  %v309_v25 = vmul.u32 %v307_v18, %v282_v13 }
  0xb9   :  { %v177_v19 = vadd.s32 %v176_v14, %v172_v5  ;;  %v310_v28 = vmul.u32 %v306_v17, %v283_v20  ;;  %v308_v40 = vmul.u32 %v306_v17, %v282_v13  ;;  %v311_v45 = vmul.u32 %v307_v18, %v283_v20 }
  0xba   :  { %v287_v30 = vmul.u32 %v285_v24, %v282_v13  ;;  %v288_v32 = vmul.u32 %v284_v6, %v283_v20  ;;  %v312_v41 = vshll.u32 %v309_v25, 16  ;;  %v286_v42 = vmul.u32 %v284_v6, %v282_v13 }
  0xbb   :  { %v178_v26 = vadd.s32 536870912, %v177_v19  ;;  %v289_v43 = vmul.u32 %v285_v24, %v283_v20  ;;  %v314_v47 = vshll.u32 %v310_v28, 16  ;;  %v313_v54 = vshrl.u32 %v309_v25, 16  ;;  %v393_v24 = vld [vmem:[%s704_s4 + $0x18] sm:$0xff] }
  0xbc   :  { %v290_v37 = vshll.u32 %v287_v30, 16  ;;  %vm316_vm1 = vc.u32 %v308_v40, %v312_v41  ;;  %v318_v48 = vadd.s32 %v312_v41, %v308_v40  ;;  %v292_v49 = vshll.u32 %v288_v32, 16  ;;  %413 = vmatpush.msra.mxu1 %v393_v24  ;;  %445 = vmatpush.msra.mxu2 %v393_v24 }
  0xbd   :  { %v616_v34 = vshrl.u32 %v178_v26, 30  ;;  %v317_v36 = vsel %vm316_vm1, 1, %v479_v38  ;;  %v269_v61 = vsel %vm265_vm12, %v249_v23, %v575_v57  ;;  %v271_v29 = vsel %vm267_vm15, %v577_v58, %v270_v39 }
  0xbe   :  { %vm294_vm2 = vc.u32 %v286_v42, %v290_v37  ;;  %v296_v27 = vadd.s32 %v290_v37, %v286_v42  ;;  %v319_v52 = vadd.s32 %v317_v36, %v311_v45  ;;  %vm320_vm3 = vc.u32 %v318_v48, %v314_v47 }
  0xbf   :  { %v180_v46 = vshll.u32 %v616_v34, 30  ;;  %v295_v51 = vsel %vm294_vm2, 1, %v479_v38  ;;  %v321_v55 = vsel %vm320_vm3, 1, %v479_v38  ;;  %v291_v62 = vshrl.u32 %v287_v30, 16  ;;  %v390_v30 = vld [vmem:[%s704_s4] sm:$0xff] }
  0xc0   :  { %v297_v53 = vadd.s32 %v295_v51, %v289_v43  ;;  %vm298_vm4 = vc.u32 %v296_v27, %v292_v49  ;;  %v323_v60 = vadd.s32 %v321_v55, %v319_v52  ;;  %v315_v1 = vshrl.u32 %v310_v28, 16 }
  0xc1   :  { %v181_v50 = vsub.s32 %v177_v19, %v180_v46  ;;  %v299_v59 = vsel %vm298_vm4, 1, %v479_v38  ;;  %v293_v44 = vshrl.u32 %v288_v32, 16  ;;  %v272_v38 = vsel %vm266_vm0, %v269_v61, %v271_v29 }
  0xc2   :  { %v301_v0 = vadd.s32 %v299_v59, %v297_v53  ;;  %v324_v2 = vadd.s32 %v323_v60, %v313_v54  ;;  %v322_v11 = vadd.s32 %v318_v48, %v314_v47  ;;  %v326_v13 = vmul.u32 %v560_v7, %v272_v38  ;;  %v392_v7 = vld [vmem:[%s704_s4 + $0x10] sm:$0xff] }
  0xc3   :  { %vm182_vm5 = vcmp.lt.s32.totalorder %v181_v50, 0  ;;  %v183_v56 = vsub.s32 0, %v181_v50  ;;  %v173_v16 = vadd.s32 %v584_v31, %v582_v63  ;;  %v391_v63 = vld [vmem:[%s704_s4 + $0x8] sm:$0xff]  ;;  %414 = vmatpush.msra.mxu1 %v392_v7  ;;  %446 = vmatpush.msra.mxu2 %v392_v7  ;;  %vm81_vm9 = vcmp.lt.s32.totalorder %v525_v8, 0  ;;  %s667_s4 = sld [smem:[#allocation2 + $0x1]] }
  0xc4   :  { %v302_v3 = vadd.s32 %v301_v0, %v291_v62  ;;  %v325_v4 = vadd.s32 %v324_v2, %v315_v1  ;;  %vm654_vm10 = vcmp.le.f32.partialorder %v79_v9, 0.7853982  ;;  %v203_v9 = vsub.s32 4, %v616_v34 }
  0xc5   :  { %v184_v33 = vsel %vm182_vm5, %v183_v56, %v181_v50  ;;  %415 = vmatpush.msra.mxu1 %v391_v63  ;;  %447 = vmatpush.msra.mxu2 %v391_v63  ;;  %vm673_vm12 = vcmp.le.f32.partialorder %v233_v21, 0.7853982  ;;  %vm235_vm13 = vcmp.lt.s32.totalorder %v531_v15, 0  ;;  %vm222_vm1 = vweird.f32 %v525_v8 }
  0xc6   :  { %v185_v35 = vclz %v184_v33  ;;  %v303_v10 = vadd.s32 %v302_v3, %v293_v44  ;;  %v329_v57 = vadd.s32 1, %v325_v4  ;;  %v204_v1 = vsel %vm81_vm9, %v203_v9, %v616_v34 }
  0xc7   :  { %416 = vmatpush.msra.mxu1 %v390_v30  ;;  %448 = vmatpush.msra.mxu2 %v390_v30  ;;  %v206_v3 = vsel %vm654_vm10, 0, %v204_v1  ;;  %vm394_vm2 = vcmask 261120  }
  0xc8   :  { %v437_v5 = vadd.s32 4294967294, %v185_v35  ;;  %vm328_vm7 = vc.u32 %v303_v10, %v322_v11  ;;  %v327_v52 = vadd.s32 %v322_v11, %v303_v10 }
  0xc9   :  { %v330_v14 = vsel %vm328_vm7, %v329_v57, %v325_v4  ;;  %vm424_vm7 = vcmask 31744  }
  0xca   :  { %vm438_vm6 = vcmp.lt.s32.totalorder %v437_v5, 0  ;;  %v331_v19 = vadd.s32 %v330_v14, %v326_v13 }
  0xcb   :  { %v188_v58 = vsel %vm438_vm6, 0, %v437_v5  ;;  %vm376_vm6 = vweird.f32 %v531_v15 }
  0xcc   :  { %v189_v17 = vsub.s32 32, %v188_v58  ;;  %v193_v18 = vsub.s32 4294967266, %v188_v58  ;;  %v190_v22 = vshll.u32 %v181_v50, %v188_v58  ;;  %v332_v6 = vadd.s32 536870912, %v331_v19 }
  0xcd   :  { %v223_v58 = vand.u32 3, %v206_v3 }
  0xce   :  { %v191_v12 = vshrl.u32 %v173_v16, %v189_v17  ;;  %v194_v20 = vadd.s32 127, %v193_v18  ;;  %v642_v28 = vshrl.u32 %v332_v6, 30  ;;  %v387_v6 = vstv %s667_s4 }
  0xcf   :  { %vm224_vm14 = vcmp.lt.s32.totalorder %v223_v58, 2  ;;  %vm225_vm15 = vcmp.eq.s32.totalorder %v223_v58, 0  ;;  %vm228_vm0 = vcmp.eq.s32.totalorder %v223_v58, 2 }
  0xd0   :  { %v192_v25 = vor.u32 %v191_v12, %v190_v22  ;;  %v195_v26 = vshll.u32 %v194_v20, 23  ;;  %v334_v23 = vshll.u32 %v642_v28, 30 }
  0xd2   :  { %v196_v31 = vor.u32 4788187, %v195_v26  ;;  %v199_v39 = vcvt.s32.f32 %v192_v25  ;;  %v335_v40 = vsub.s32 %v331_v19, %v334_v23 }
  0xd4   :  { %v197_v32 = vand.u32 2147483647, %v196_v31  ;;  %vm336_vm8 = vcmp.lt.s32.totalorder %v335_v40, 0  ;;  %v337_v42 = vsub.s32 0, %v335_v40  ;;  %v357_v31 = vsub.s32 4, %v642_v28 }
  0xd6   :  { %v200_v41 = vmul.f32 %v199_v39, %v197_v32  ;;  %v338_v37 = vsel %vm336_vm8, %v337_v42, %v335_v40 }
  0xd7   :  { %v339_v45 = vclz %v338_v37 }
  0xd8   :  { %v201_v43 = vxor.u32 2147483648, %v200_v41 }
  0xd9   :  { %v440_v49 = vadd.s32 4294967294, %v339_v45 }
  0xda   :  { %v202_v47 = vsel %vm81_vm9, %v201_v43, %v200_v41 }
  0xdb   :  { %v205_v48 = vsel %vm654_vm10, %v525_v8, %v202_v47  ;;  %vm441_vm11 = vcmp.lt.s32.totalorder %v440_v49, 0 }
  0xdc   :  { %v207_v27 = vmul.f32 %v205_v48, %v205_v48  ;;  %v342_v36 = vsel %vm441_vm11, 0, %v440_v49 }
  0xdd   :  { %v343_v53 = vsub.s32 32, %v342_v36  ;;  %v347_v54 = vsub.s32 4294967266, %v342_v36  ;;  %v344_v59 = vshll.u32 %v335_v40, %v342_v36  ;;  %v358_v40 = vsel %vm235_vm13, %v357_v31, %v642_v28 }
  0xde   :  { %v208_v50 = vmul.f32 -0.001358992, %v207_v27  ;;  %v215_v51 = vmul.f32 -0.00019511016, %v207_v27  ;;  %v360_v42 = vsel %vm673_vm12, 0, %v358_v40 }
  0xdf   :  { %v345_v60 = vshrl.u32 %v327_v52, %v343_v53  ;;  %v348_v61 = vadd.s32 127, %v347_v54  ;;  %v377_v47 = vand.u32 3, %v360_v42 }
  0xe0   :  { %v209_v55 = vadd.f32 0.041655596, %v208_v50  ;;  %v216_v56 = vadd.f32 0.008332121, %v215_v51 }
  0xe1   :  { %v346_v0 = vor.u32 %v345_v60, %v344_v59  ;;  %v349_v33 = vshll.u32 %v348_v61, 23  ;;  %vm379_vm3 = vcmp.eq.s32.totalorder %v377_v47, 0  ;;  %vm382_vm4 = vcmp.eq.s32.totalorder %v377_v47, 2 }
  0xe2   :  { %v210_v29 = vmul.f32 %v209_v55, %v207_v27  ;;  %v217_v62 = vmul.f32 %v216_v56, %v207_v27  ;;  %vm378_vm5 = vcmp.lt.s32.totalorder %v377_v47, 2 }
  0xe3   :  { %v350_v44 = vor.u32 4788187, %v349_v33  ;;  %v353_v10 = vcvt.s32.f32 %v346_v0 }
  0xe4   :  { %v211_v2 = vadd.f32 -0.4999988, %v210_v29  ;;  %v218_v35 = vadd.f32 -0.16666654, %v217_v62 }
  0xe5   :  { %v351_v5 = vand.u32 2147483647, %v350_v44 }
  0xe6   :  { %v212_v38 = vmul.f32 %v211_v2, %v207_v27  ;;  %v219_v4 = vmul.f32 %v218_v35, %v207_v27 }
  0xe7   :  { %v354_v13 = vmul.f32 %v353_v10, %v351_v5 }
  0xe8   :  { %v213_v11 = vadd.f32 1.0, %v212_v38  ;;  %v220_v57 = vadd.f32 1.0, %v219_v4 }
  0xe9   :  { %v355_v34 = vxor.u32 2147483648, %v354_v13 }
  0xea   :  { %v221_v14 = vmul.f32 %v220_v57, %v205_v48  ;;  %v229_v16 = vxor.u32 2147483648, %v213_v11 }
  0xeb   :  { %v356_v19 = vsel %vm235_vm13, %v355_v34, %v354_v13 }
  0xec   :  { %v226_v18 = vxor.u32 2147483648, %v221_v14  ;;  %v359_v22 = vsel %vm673_vm12, %v531_v15, %v356_v19  ;;  %v230_v20 = vsel %vm228_vm0, %v229_v16, %v221_v14 }
  0xed   :  { %v361_v21 = vmul.f32 %v359_v22, %v359_v22 }
  0xee   :  { %v227_v12 = vsel %vm225_vm15, %v213_v11, %v226_v18 }
  0xef   :  { %v231_v24 = vsel %vm224_vm14, %v227_v12, %v230_v20  ;;  %v362_v26 = vmul.f32 -0.001358992, %v361_v21  ;;  %v369_v63 = vmul.f32 -0.00019511016, %v361_v21 }
  0xf0   :  { %v232_v7 = vsel %vm222_vm1, nan, %v231_v24 }
  0xf1   :  { %v388_v25 = vmul.f32 %v387_v6, %v232_v7  ;;  %v363_v23 = vadd.f32 0.041655596, %v362_v26  ;;  %v370_v30 = vadd.f32 0.008332121, %v369_v63 }
  0xf3   :  { %442 = vmatmul.msk.f32.vlgmr.msra.gmra.mxu1 %vm394_vm2, %v388_v25  ;;  %v364_v32 = vmul.f32 %v363_v23, %v361_v21  ;;  %v371_v39 = vmul.f32 %v370_v30, %v361_v21 }
  0xf5   :  { %v365_v41 = vadd.f32 -0.4999988, %v364_v32  ;;  %v372_v8 = vadd.f32 -0.16666654, %v371_v39 }
  0xf7   :  { %v366_v43 = vmul.f32 %v365_v41, %v361_v21  ;;  %v373_v37 = vmul.f32 %v372_v8, %v361_v21 }
  0xf9   :  { %v367_v45 = vadd.f32 1.0, %v366_v43  ;;  %v374_v46 = vadd.f32 1.0, %v373_v37 }
  0xfb   :  { %v375_v48 = vmul.f32 %v374_v46, %v359_v22  ;;  %v383_v49 = vxor.u32 2147483648, %v367_v45 }
  0xfd   :  { %v380_v27 = vxor.u32 2147483648, %v375_v48  ;;  %v384_v50 = vsel %vm382_vm4, %v383_v49, %v375_v48 }
  0xff   :  { %v381_v36 = vsel %vm379_vm3, %v367_v45, %v380_v27 }
 0x100   :  { %v385_v28 = vsel %vm378_vm5, %v381_v36, %v384_v50 }
 0x101   :  { %v386_v51 = vsel %vm376_vm6, nan, %v385_v28 }
 0x102   :  { %v389_v52 = vmul.f32 %v387_v6, %v386_v51 }
 0x104   :  { %443 = vmatmul.msk.f32.vlgmr.msra.gmra.mxu2 %vm394_vm2, %v389_v52 }
 0x170   :  { %v418_v53 = vpop.f32.mrf.mxu1 }
 0x171   :  { %425 = vst.msk [vmem:[%s705_s5] sm:$0xff] %vm424_vm7, %v418_v53 }
 0x187   :  { %v421_v54 = vpop.f32.mrf.mxu2 }
 0x188   :  { %426 = vst.msk [vmem:[%s705_s5 + $0x8] sm:$0xff] %vm424_vm7, %v421_v54 }
 0x189   :  { %431 = vsyncpa [#allocation3], 1 }

</bundles_post_ra>
